<compile_context>
chip_gen: v6e
topology: v6e:2x2x1
jax: 0.10.0
libtpu: 0.0.40
codegen_flags: <defaults>
</compile_context>

<pallas_src>
import math

import jax
import jax.numpy as jnp
from jax.experimental import pallas as pl
from jax.experimental.pallas import tpu as pltpu

HIDDEN = 256


def actor_kernel(const_ref, state_ref, w1_ref, b1_ref, w2_ref, b2_ref,
                 wm_ref, bm_ref, std_ref, eps_ref, out_ref):
    x = state_ref[...]                                              # (TB, D_in) bf16

    # net: Linear -> ReLU -> Linear -> ReLU  (bf16 operands, f32 MXU accumulation)
    h1 = jnp.dot(x, w1_ref[...], preferred_element_type=jnp.float32) + b1_ref[...]
    h1 = jnp.maximum(h1, 0.0).astype(jnp.bfloat16)
    h2 = jnp.dot(h1, w2_ref[...], preferred_element_type=jnp.float32) + b2_ref[...]
    h2 = jnp.maximum(h2, 0.0).astype(jnp.bfloat16)

    # mean_layer
    mean = jnp.dot(h2, wm_ref[...], preferred_element_type=jnp.float32) + bm_ref[...]

    # dist.sample(): reparameterized mean + std * eps (eps supplied by wrapper).
    eps = eps_ref[...]                                              # (TB, D_out) f32
    action = mean + std_ref[...] * eps

    # Normal(mean, std).log_prob(action).sum(-1):
    #   (action-mean)^2/(2*var) == 0.5*eps^2 exactly, and
    #   -(log_std + 0.5*log(2*pi)) summed over D is the prefetched constant.
    logp = -0.5 * jnp.sum(eps * eps, axis=-1, keepdims=True) + const_ref[0]

    # Single merged store: lanes [0:D_out] = action, lane D_out = log_prob.
    out_ref[...] = jnp.concatenate([action, logp], axis=-1)


def _pick_batch_tile(B, block_b):
    tb = min(block_b, B)
    # Megacore (v7x): if the batch is large but would fit in one tile, split it
    # so the grid has >= 2 steps and dimension_semantics=("parallel",) can
    # shard the batch axis across both TensorCores.  VMEM is not the constraint
    # here (a TB=1024 tile is ~2-3 MiB of activations).
    if B > 256 and pl.cdiv(B, tb) < 2:
        tb = ((pl.cdiv(B, 2) + 7) // 8) * 8
        tb = min(tb, B)
    return tb


def actor_forward(state, params, key, *, block_b=1024):
    """state: (B, D_in) f32. Returns (action (B, D_out) f32, log_prob (B,) f32)."""
    B, d_in = state.shape
    hidden = params["w1"].shape[1]
    out_dim = params["wm"].shape[1]

    tb = _pick_batch_tile(B, block_b)
    grid = (pl.cdiv(B, tb),)

    x = state.astype(jnp.bfloat16)

    # Hoisted, batch-independent pieces.
    log_std = params["log_std"]                                   # (1, D_out) f32
    std = jnp.exp(log_std)                                        # (1, D_out) f32
    const = -(jnp.sum(log_std) + 0.5 * out_dim * math.log(2.0 * math.pi))
    const = jnp.reshape(const, (1,)).astype(jnp.float32)          # SMEM scalar

    # Reparameterization noise, exactly (B, D_out) — no over-generation.
    eps = jax.random.normal(key, (B, out_dim), jnp.float32)

    def batch_map(i, const_ref):          # scalar-prefetch ref passed positionally
        return (i, 0)

    def const_map(i, const_ref):          # weights/biases stay VMEM-resident
        return (0, 0)

    grid_spec = pltpu.PrefetchScalarGridSpec(
        num_scalar_prefetch=1,
        grid=grid,
        in_specs=[
            pl.BlockSpec((tb, d_in), batch_map),         # state tile
            pl.BlockSpec((d_in, hidden), const_map),     # w1
            pl.BlockSpec((1, hidden), const_map),        # b1
            pl.BlockSpec((hidden, hidden), const_map),   # w2
            pl.BlockSpec((1, hidden), const_map),        # b2
            pl.BlockSpec((hidden, out_dim), const_map),  # wm
            pl.BlockSpec((1, out_dim), const_map),       # bm
            pl.BlockSpec((1, out_dim), const_map),       # std (pre-exp'd)
            pl.BlockSpec((tb, out_dim), batch_map),      # eps noise tile
        ],
        out_specs=pl.BlockSpec((tb, out_dim + 1), batch_map),  # [action | logp]
    )

    flops = 2 * B * (d_in * hidden + hidden * hidden + hidden * out_dim)
    bytes_accessed = (
        B * d_in * 2                                                 # state (bf16)
        + (d_in * hidden + hidden * hidden + hidden * out_dim) * 2   # weights (bf16)
        + (2 * hidden + 2 * out_dim) * 4                             # biases + std
        + B * out_dim * 4                                            # eps in (f32)
        + B * (out_dim + 1) * 4                                      # merged output
    )
    cost = pl.CostEstimate(flops=flops, transcendentals=0,
                           bytes_accessed=bytes_accessed)

    out = pl.pallas_call(
        actor_kernel,
        grid_spec=grid_spec,
        out_shape=jax.ShapeDtypeStruct((B, out_dim + 1), jnp.float32),
        compiler_params=pltpu.CompilerParams(
            dimension_semantics=("parallel",),   # shard batch tiles across TCs (v7x)
        ),
        cost_estimate=cost,
    )(const, x,
      params["w1"], params["b1"],
      params["w2"], params["b2"],
      params["wm"], params["bm"],
      std, eps)

    action = out[:, :out_dim]
    log_prob = out[:, out_dim]
    return action, log_prob


def init_actor_params(key, input_dim, output_dim, hidden=HIDDEN):
    # Mimics nn.Linear's default U(-1/sqrt(fan_in), 1/sqrt(fan_in)) init.
    k1, k2, k3, k4, k5, k6 = jax.random.split(key, 6)

    def lin(kw, kb, fan_in, fan_out):
        bound = 1.0 / math.sqrt(fan_in)
        w = jax.random.uniform(kw, (fan_in, fan_out), jnp.float32, -bound, bound)
        b = jax.random.uniform(kb, (1, fan_out), jnp.float32, -bound, bound)
        # Weights stored bf16 once here (not per-call); biases stay f32 and are
        # added to the f32 accumulator inside the kernel.
        return w.astype(jnp.bfloat16), b

    w1, b1 = lin(k1, k2, input_dim, hidden)
    w2, b2 = lin(k3, k4, hidden, hidden)
    wm, bm = lin(k5, k6, hidden, output_dim)
    log_std = jnp.zeros((1, output_dim), jnp.float32)  # nn.Parameter(torch.zeros(1, out))
    return {"w1": w1, "b1": b1, "w2": w2, "b2": b2,
            "wm": wm, "bm": bm, "log_std": log_std}


if __name__ == "__main__":
    key = jax.random.PRNGKey(0)
    k_params, k_state, k_noise = jax.random.split(key, 3)

    batch = 8
    input_dim = 16
    output_dim = 8

    params = init_actor_params(k_params, input_dim, output_dim)
    state = jax.random.normal(k_state, (batch, input_dim), jnp.float32)

    action, log_prob = actor_forward(state, params, k_noise)
    jax.block_until_ready((action, log_prob))

    # Reference check in plain JAX with the same bf16 operands, f32 accumulation
    # and the same eps (noise is an explicit input, so this is a direct check).
    eps = jax.random.normal(k_noise, (batch, output_dim), jnp.float32)
    x = state.astype(jnp.bfloat16)
    h1 = jnp.maximum(jnp.dot(x, params["w1"], preferred_element_type=jnp.float32)
                     + params["b1"], 0.0).astype(jnp.bfloat16)
    h2 = jnp.maximum(jnp.dot(h1, params["w2"], preferred_element_type=jnp.float32)
                     + params["b2"], 0.0).astype(jnp.bfloat16)
    mean = jnp.dot(h2, params["wm"], preferred_element_type=jnp.float32) + params["bm"]
    std = jnp.exp(params["log_std"])

    action_ref = mean + std * eps
    lp_ref = jnp.sum(-0.5 * eps ** 2 - params["log_std"]
                     - 0.5 * math.log(2.0 * math.pi), axis=-1)

    assert action.shape == (batch, output_dim) and log_prob.shape == (batch,)
    assert bool(jnp.all(jnp.isfinite(action))), "non-finite action"
    assert bool(jnp.all(jnp.isfinite(log_prob))), "non-finite log_prob"
    assert jnp.allclose(action, action_ref, atol=5e-3, rtol=1e-3), "action mismatch"
    assert jnp.allclose(log_prob, lp_ref, atol=5e-3, rtol=1e-3), "log_prob mismatch"

    print("KERNEL_OK")
</pallas_src>

<mosaic_0001>
module attributes {stable_mosaic.version = 11 : i64} {
  func.func @actor_kernel(%arg0: i32, %arg1: memref<1xf32, #tpu.memory_space<smem>>, %arg2: memref<8x16xbf16, #tpu.memory_space<vmem>>, %arg3: memref<16x256xbf16, #tpu.memory_space<vmem>>, %arg4: memref<1x256xf32, #tpu.memory_space<vmem>>, %arg5: memref<256x256xbf16, #tpu.memory_space<vmem>>, %arg6: memref<1x256xf32, #tpu.memory_space<vmem>>, %arg7: memref<256x8xbf16, #tpu.memory_space<vmem>>, %arg8: memref<1x8xf32, #tpu.memory_space<vmem>>, %arg9: memref<1x8xf32, #tpu.memory_space<vmem>>, %arg10: memref<8x8xf32, #tpu.memory_space<vmem>>, %arg11: memref<8x9xf32, #tpu.memory_space<vmem>>) attributes {dimension_semantics = [#tpu.dimension_semantics<parallel>], iteration_bounds = array<i64: 1>, scalar_prefetch = 1 : i64, scratch_operands = 0 : i64, tpu.core_type = #tpu.core_type<tc>, window_params = [{transform_indices = @transform_0, window_bounds = array<i64: 8, 16>}, {pipeline_mode = #tpu.pipeline_mode<synchronous>, transform_indices = @transform_1, window_bounds = array<i64: 16, 256>}, {pipeline_mode = #tpu.pipeline_mode<synchronous>, transform_indices = @transform_2, window_bounds = array<i64: 1, 256>}, {pipeline_mode = #tpu.pipeline_mode<synchronous>, transform_indices = @transform_3, window_bounds = array<i64: 256, 256>}, {pipeline_mode = #tpu.pipeline_mode<synchronous>, transform_indices = @transform_4, window_bounds = array<i64: 1, 256>}, {pipeline_mode = #tpu.pipeline_mode<synchronous>, transform_indices = @transform_5, window_bounds = array<i64: 256, 8>}, {pipeline_mode = #tpu.pipeline_mode<synchronous>, transform_indices = @transform_6, window_bounds = array<i64: 1, 8>}, {pipeline_mode = #tpu.pipeline_mode<synchronous>, transform_indices = @transform_7, window_bounds = array<i64: 1, 8>}, {transform_indices = @transform_8, window_bounds = array<i64: 8, 8>}, {transform_indices = @transform_9, window_bounds = array<i64: 8, 9>}]} {
    %c0 = arith.constant 0 : index
    %c0_0 = arith.constant 0 : index
    %0 = vector.load %arg2[%c0, %c0_0] : memref<8x16xbf16, #tpu.memory_space<vmem>>, vector<8x16xbf16>
    %c0_1 = arith.constant 0 : index
    %c0_2 = arith.constant 0 : index
    %1 = vector.load %arg3[%c0_1, %c0_2] : memref<16x256xbf16, #tpu.memory_space<vmem>>, vector<16x256xbf16>
    %cst = arith.constant dense<0.000000e+00> : vector<8x256xf32>
    %2 = tpu.matmul %0, %1, %cst {dimension_numbers = #tpu.dot_dimension_numbers<[1], [0], [0], [1], [0, 0, 1, 1], [], []>} : vector<8x16xbf16>, vector<16x256xbf16>, vector<8x256xf32> -> vector<8x256xf32>
    %c0_3 = arith.constant 0 : index
    %c0_4 = arith.constant 0 : index
    %3 = vector.load %arg4[%c0_3, %c0_4] : memref<1x256xf32, #tpu.memory_space<vmem>>, vector<1x256xf32>
    %4 = vector.broadcast %3 : vector<1x256xf32> to vector<8x256xf32>
    %5 = arith.addf %2, %4 : vector<8x256xf32>
    %cst_5 = arith.constant 0.000000e+00 : f32
    %6 = vector.broadcast %cst_5 : f32 to vector<8x256xf32>
    %7 = arith.maximumf %5, %6 : vector<8x256xf32>
    %8 = arith.truncf %7 : vector<8x256xf32> to vector<8x256xbf16>
    %c0_6 = arith.constant 0 : index
    %c0_7 = arith.constant 0 : index
    %9 = vector.load %arg5[%c0_6, %c0_7] : memref<256x256xbf16, #tpu.memory_space<vmem>>, vector<256x256xbf16>
    %cst_8 = arith.constant dense<0.000000e+00> : vector<8x256xf32>
    %10 = tpu.matmul %8, %9, %cst_8 {dimension_numbers = #tpu.dot_dimension_numbers<[1], [0], [0], [1], [0, 0, 1, 1], [], []>} : vector<8x256xbf16>, vector<256x256xbf16>, vector<8x256xf32> -> vector<8x256xf32>
    %c0_9 = arith.constant 0 : index
    %c0_10 = arith.constant 0 : index
    %11 = vector.load %arg6[%c0_9, %c0_10] : memref<1x256xf32, #tpu.memory_space<vmem>>, vector<1x256xf32>
    %12 = vector.broadcast %11 : vector<1x256xf32> to vector<8x256xf32>
    %13 = arith.addf %10, %12 : vector<8x256xf32>
    %cst_11 = arith.constant 0.000000e+00 : f32
    %14 = vector.broadcast %cst_11 : f32 to vector<8x256xf32>
    %15 = arith.maximumf %13, %14 : vector<8x256xf32>
    %16 = arith.truncf %15 : vector<8x256xf32> to vector<8x256xbf16>
    %c0_12 = arith.constant 0 : index
    %c0_13 = arith.constant 0 : index
    %17 = vector.load %arg7[%c0_12, %c0_13] : memref<256x8xbf16, #tpu.memory_space<vmem>>, vector<256x8xbf16>
    %cst_14 = arith.constant dense<0.000000e+00> : vector<8x8xf32>
    %18 = tpu.matmul %16, %17, %cst_14 {dimension_numbers = #tpu.dot_dimension_numbers<[1], [0], [0], [1], [0, 0, 1, 1], [], []>} : vector<8x256xbf16>, vector<256x8xbf16>, vector<8x8xf32> -> vector<8x8xf32>
    %c0_15 = arith.constant 0 : index
    %c0_16 = arith.constant 0 : index
    %19 = vector.load %arg8[%c0_15, %c0_16] : memref<1x8xf32, #tpu.memory_space<vmem>>, vector<1x8xf32>
    %20 = vector.broadcast %19 : vector<1x8xf32> to vector<8x8xf32>
    %21 = arith.addf %18, %20 : vector<8x8xf32>
    %c0_17 = arith.constant 0 : index
    %c0_18 = arith.constant 0 : index
    %22 = vector.load %arg10[%c0_17, %c0_18] : memref<8x8xf32, #tpu.memory_space<vmem>>, vector<8x8xf32>
    %c0_19 = arith.constant 0 : index
    %c0_20 = arith.constant 0 : index
    %23 = vector.load %arg9[%c0_19, %c0_20] : memref<1x8xf32, #tpu.memory_space<vmem>>, vector<1x8xf32>
    %24 = vector.broadcast %23 : vector<1x8xf32> to vector<8x8xf32>
    %25 = arith.mulf %24, %22 : vector<8x8xf32>
    %26 = arith.addf %21, %25 : vector<8x8xf32>
    %27 = arith.mulf %22, %22 : vector<8x8xf32>
    %cst_21 = arith.constant dense<0.000000e+00> : vector<8xf32>
    %28 = vector.multi_reduction <add>, %27, %cst_21 [1] : vector<8x8xf32> to vector<8xf32>
    %29 = vector.shape_cast %28 : vector<8xf32> to vector<8x1xf32>
    %cst_22 = arith.constant -5.000000e-01 : f32
    %30 = vector.broadcast %cst_22 : f32 to vector<8x1xf32>
    %31 = arith.mulf %30, %29 : vector<8x1xf32>
    %c0_23 = arith.constant 0 : index
    %32 = memref.load %arg1[%c0_23] : memref<1xf32, #tpu.memory_space<smem>>
    %33 = vector.broadcast %32 : f32 to vector<8x1xf32>
    %34 = arith.addf %31, %33 : vector<8x1xf32>
    %35 = tpu.concatenate %26, %34 in 1 : vector<8x8xf32>, vector<8x1xf32> -> vector<8x9xf32>
    %c0_24 = arith.constant 0 : index
    %c0_25 = arith.constant 0 : index
    %36 = vector.load %arg11[%c0_24, %c0_25] : memref<8x9xf32, #tpu.memory_space<vmem>>, vector<8x9xf32>
    tpu.vector_store %arg11[%c0_24, %c0_25], %35 {strides = array<i32>} : memref<8x9xf32, #tpu.memory_space<vmem>>, vector<8x9xf32>,
    return
  }
  func.func @transform_0(%arg0: i32, %arg1: memref<1xf32, #tpu.memory_space<smem>>) -> (i32, i32) {
    %c0_i32 = arith.constant 0 : i32
    %c0_i32_0 = arith.constant 0 : i32
    return %arg0, %c0_i32 : i32, i32
  }
  func.func @transform_1(%arg0: i32, %arg1: memref<1xf32, #tpu.memory_space<smem>>) -> (i32, i32) {
    %c0_i32 = arith.constant 0 : i32
    %c0_i32_0 = arith.constant 0 : i32
    %c0_i32_1 = arith.constant 0 : i32
    return %c0_i32, %c0_i32_0 : i32, i32
  }
  func.func @transform_2(%arg0: i32, %arg1: memref<1xf32, #tpu.memory_space<smem>>) -> (i32, i32) {
    %c0_i32 = arith.constant 0 : i32
    %c0_i32_0 = arith.constant 0 : i32
    %c0_i32_1 = arith.constant 0 : i32
    return %c0_i32, %c0_i32_0 : i32, i32
  }
  func.func @transform_3(%arg0: i32, %arg1: memref<1xf32, #tpu.memory_space<smem>>) -> (i32, i32) {
    %c0_i32 = arith.constant 0 : i32
    %c0_i32_0 = arith.constant 0 : i32
    %c0_i32_1 = arith.constant 0 : i32
    return %c0_i32, %c0_i32_0 : i32, i32
  }
  func.func @transform_4(%arg0: i32, %arg1: memref<1xf32, #tpu.memory_space<smem>>) -> (i32, i32) {
    %c0_i32 = arith.constant 0 : i32
    %c0_i32_0 = arith.constant 0 : i32
    %c0_i32_1 = arith.constant 0 : i32
    return %c0_i32, %c0_i32_0 : i32, i32
  }
  func.func @transform_5(%arg0: i32, %arg1: memref<1xf32, #tpu.memory_space<smem>>) -> (i32, i32) {
    %c0_i32 = arith.constant 0 : i32
    %c0_i32_0 = arith.constant 0 : i32
    %c0_i32_1 = arith.constant 0 : i32
    return %c0_i32, %c0_i32_0 : i32, i32
  }
  func.func @transform_6(%arg0: i32, %arg1: memref<1xf32, #tpu.memory_space<smem>>) -> (i32, i32) {
    %c0_i32 = arith.constant 0 : i32
    %c0_i32_0 = arith.constant 0 : i32
    %c0_i32_1 = arith.constant 0 : i32
    return %c0_i32, %c0_i32_0 : i32, i32
  }
  func.func @transform_7(%arg0: i32, %arg1: memref<1xf32, #tpu.memory_space<smem>>) -> (i32, i32) {
    %c0_i32 = arith.constant 0 : i32
    %c0_i32_0 = arith.constant 0 : i32
    %c0_i32_1 = arith.constant 0 : i32
    return %c0_i32, %c0_i32_0 : i32, i32
  }
  func.func @transform_8(%arg0: i32, %arg1: memref<1xf32, #tpu.memory_space<smem>>) -> (i32, i32) {
    %c0_i32 = arith.constant 0 : i32
    %c0_i32_0 = arith.constant 0 : i32
    return %arg0, %c0_i32 : i32, i32
  }
  func.func @transform_9(%arg0: i32, %arg1: memref<1xf32, #tpu.memory_space<smem>>) -> (i32, i32) {
    %c0_i32 = arith.constant 0 : i32
    %c0_i32_0 = arith.constant 0 : i32
    return %arg0, %c0_i32 : i32, i32
  }
}

</mosaic_0001>

<bundles_post_ra>
// kernel: tpu_custom_call.1
= control target key start
LH: loop header
LB: loop body
LE: loop exit
PB: predicated region body
PF: predicated region fallthrough
CT: control target
= control target key end

     0   :  { %16 = vsyncpa [#allocation5], 0  ;;  %s919_s0 = inlined_call_operand.<no memory space> [shape: f32[1], index: 0, kind: input, shape index: {}]   ;;  %s920_s1 = inlined_call_operand.vmem [shape: bf16[8,16], index: 1, kind: input, shape index: {}]   ;;  %s921_s2 = inlined_call_operand.vmem [shape: bf16[16,256], index: 2, kind: input, shape index: {}]   ;;  %s922_s3 = inlined_call_operand.vmem [shape: f32[1,256], index: 3, kind: input, shape index: {}]   ;;  %s923_s4 = inlined_call_operand.hbm [shape: bf16[256,256], index: 4, kind: input, shape index: {}]   ;;  %s924_s5 = inlined_call_operand.vmem [shape: f32[1,256], index: 5, kind: input, shape index: {}]   ;;  %s925_s6 = inlined_call_operand.vmem [shape: bf16[256,8], index: 6, kind: input, shape index: {}]   ;;  %s926_s7 = inlined_call_operand.vmem [shape: f32[1,8], index: 7, kind: input, shape index: {}]   ;;  %s927_s8 = inlined_call_operand.vmem [shape: f32[1,8], index: 8, kind: input, shape index: {}]   ;;  %s928_s9 = inlined_call_operand.vmem [shape: f32[8,8], index: 9, kind: input, shape index: {}]   ;;  %s929_s10 = inlined_call_operand.hbm [shape: f32[8,9], index: 10, kind: output, shape index: {}]  }
   0x1   :  { %17 = vsyncpa [#allocation6], 0  ;;  %s776_s13 = smov [#allocation4]  }
   0x2   :  { %s29_s14 = sshll.u32 %s776_s13, 4  ;;  %s30_s14 = int_to_ptr.vmem [resolvable:$true] %s29_s14 }
   0x3   :  { %s740_s15 = scalar_lea.vmem %s30_s14, 4096  ;;  %p745_p1 = scmp.lt.s32.totalorder %s30_s14, %s30_s14 }
   0x4   :  { %p741_p0 = scmp.ne.s32.totalorder %s30_s14, %s740_s15  ;;  %p746_p2 = scmp.lt.s32.totalorder %s740_s15, %s740_s15 }
   0x6   :  { %p747_p3 = por %p746_p2, %p745_p1 }
   0x8   :  { %p748_p4 = pnand %p747_p3, %p741_p0 }
   0xa   :  { %751 = shalt.err (!%p748_p4)
}
   0xb   :  { %s777_s16 = smov 128   ;;  %s778_s17 = smov 8  }
   0xc   :  { %35 = dma.hbm_to_vmem [thread:$0]  %s923_s4, 4096, %s30_s14, [#allocation5], %s777_s16, %s777_s16, %s778_s17  }
   0xd   :  { %772 = dma.done.wait [#allocation5], 4096  }
   0xe   :  { %773 = vsyncadd [#allocation5], 4294963200  ;;  %v779_v0 = vmov 0   ;;  %v665_v1 = vld [vmem:[%s921_s2 + $0x4] ss:$8 sps:$4 sm:$0xff]   ;;  %vm75_vm0 = vcmask 130048   ;;  %v55_v48 = vlaneseq }
   0xf   :  { %111 = vmatprep.mubr.bf16.mxu0 %v779_v0  ;;  %v667_v2 = vld [vmem:[%s921_s2] ss:$8 sps:$4 sm:$0xff]   ;;  %93 = vmatprep.subr.bf16.mxu0 %v665_v1  ;;  %v668_v4 = vld [vmem:[#allocation4 + $0x74] ss:$8 sps:$4 sm:$0xff]   ;;  %v670_v5 = vld [vmem:[#allocation4 + $0x70] ss:$8 sps:$4 sm:$0xff]  }
  0x10   :  { %v50_v3 = vld [vmem:[%s920_s1] sm:$0xf]  ;;  %94 = vmatpush1.bf16.msra.mxu0 %v667_v2  ;;  %v671_v6 = vld [vmem:[#allocation4 + $0x64] ss:$8 sps:$4 sm:$0xff]   ;;  %328 = vmatprep.subr.bf16.mxu1 %v668_v4  ;;  %v674_v8 = vld [vmem:[#allocation4 + $0x54] ss:$8 sps:$4 sm:$0xff]  }
  0x11   :  { %329 = vmatpush1.bf16.msra.mxu1 %v670_v5  ;;  %v673_v7 = vld [vmem:[#allocation4 + $0x60] ss:$8 sps:$4 sm:$0xff]   ;;  %v676_v9 = vld [vmem:[#allocation4 + $0x50] ss:$8 sps:$4 sm:$0xff]   ;;  %v677_v10 = vld [vmem:[#allocation4 + $0x44] ss:$8 sps:$4 sm:$0xff]  }
  0x12   :  { %330 = vmatprep.subr.bf16.mxu1 %v671_v6  ;;  %v679_v11 = vld [vmem:[#allocation4 + $0x40] ss:$8 sps:$4 sm:$0xff]   ;;  %v680_v12 = vld [vmem:[#allocation4 + $0x34] ss:$8 sps:$4 sm:$0xff]   ;;  %v682_v13 = vld [vmem:[#allocation4 + $0x30] ss:$8 sps:$4 sm:$0xff]  }
  0x13   :  { %587 = vmatmul.mubr.msk.bf16.vlgmr.msra.gmra.mxu0 %vm75_vm0, %v50_v3  ;;  %v683_v14 = vld [vmem:[#allocation4 + $0x24] ss:$8 sps:$4 sm:$0xff]   ;;  %v685_v15 = vld [vmem:[#allocation4 + $0x20] ss:$8 sps:$4 sm:$0xff]   ;;  %v686_v16 = vld [vmem:[#allocation4 + $0x14] ss:$8 sps:$4 sm:$0xff]  }
  0x14   :  { %v688_v17 = vld [vmem:[#allocation4 + $0x10] ss:$8 sps:$4 sm:$0xff]   ;;  %v689_v18 = vld [vmem:[#allocation4 + $0x4] ss:$8 sps:$4 sm:$0xff]   ;;  %v691_v19 = vld [vmem:[#allocation4] ss:$8 sps:$4 sm:$0xff]  }
  0x15   :  { %331 = vmatpush1.bf16.msra.mxu1 %v673_v7  ;;  %v692_v20 = vld [vmem:[#allocation4 + $0xf4] ss:$8 sps:$4 sm:$0xff]   ;;  %v694_v21 = vld [vmem:[#allocation4 + $0xf0] ss:$8 sps:$4 sm:$0xff]   ;;  %v695_v22 = vld [vmem:[#allocation4 + $0xe4] ss:$8 sps:$4 sm:$0xff]  }
  0x16   :  { %332 = vmatprep.subr.bf16.mxu1 %v674_v8  ;;  %v697_v23 = vld [vmem:[#allocation4 + $0xe0] ss:$8 sps:$4 sm:$0xff]   ;;  %v698_v24 = vld [vmem:[#allocation4 + $0xd4] ss:$8 sps:$4 sm:$0xff]   ;;  %v700_v25 = vld [vmem:[#allocation4 + $0xd0] ss:$8 sps:$4 sm:$0xff]  }
  0x17   :  { %v701_v26 = vld [vmem:[#allocation4 + $0xc4] ss:$8 sps:$4 sm:$0xff]   ;;  %v703_v27 = vld [vmem:[#allocation4 + $0xc0] ss:$8 sps:$4 sm:$0xff]   ;;  %v704_v28 = vld [vmem:[#allocation4 + $0xb4] ss:$8 sps:$4 sm:$0xff]  }
  0x18   :  { %v706_v29 = vld [vmem:[#allocation4 + $0xb0] ss:$8 sps:$4 sm:$0xff]   ;;  %v707_v30 = vld [vmem:[#allocation4 + $0xa4] ss:$8 sps:$4 sm:$0xff]   ;;  %v709_v31 = vld [vmem:[#allocation4 + $0xa0] ss:$8 sps:$4 sm:$0xff]  }
  0x19   :  { %333 = vmatpush1.bf16.msra.mxu1 %v676_v9  ;;  %v710_v32 = vld [vmem:[#allocation4 + $0x94] ss:$8 sps:$4 sm:$0xff]   ;;  %v712_v33 = vld [vmem:[#allocation4 + $0x90] ss:$8 sps:$4 sm:$0xff]   ;;  %v713_v34 = vld [vmem:[#allocation4 + $0x84] ss:$8 sps:$4 sm:$0xff]  }
  0x1a   :  { %334 = vmatprep.subr.bf16.mxu1 %v677_v10  ;;  %v715_v35 = vld [vmem:[#allocation4 + $0x80] ss:$8 sps:$4 sm:$0xff]   ;;  %v716_v36 = vld [vmem:[%s925_s6 + $0x78] sm:$0xff]   ;;  %v718_v38 = vld [vmem:[%s925_s6 + $0x70] sm:$0xff]   ;;  %v56_v49 = vshrl.u32 %v55_v48, 7  ;;  %vm559_vm1 = vcmask 64512  }
  0x1b   :  { %v717_v37 = vld [vmem:[%s925_s6 + $0x38] sm:$0xff]   ;;  %638 = vmatprep.subr.bf16.mxu0 %v716_v36  ;;  %v719_v39 = vld [vmem:[%s925_s6 + $0x30] sm:$0xff]   ;;  %v720_v40 = vld [vmem:[%s925_s6 + $0x68] sm:$0xff]   ;;  %s780_s20 = smov [#allocation7]   ;;  %vm568_vm2 = vcmask 72704  }
  0x1c   :  { %639 = vmatpush3.bf16.msra.mxu0 %v717_v37  ;;  %v721_v41 = vld [vmem:[%s925_s6 + $0x28] sm:$0xff]   ;;  %v722_v42 = vld [vmem:[%s925_s6 + $0x60] sm:$0xff]   ;;  %v724_v44 = vld [vmem:[%s925_s6 + $0x58] sm:$0xff]   ;;  %v57_v50 = vsub.s32 0, %v56_v49  ;;  %v61_v52 = vsub.s32 1, %v56_v49  ;;  %s576_s21 = sshll.u32 %s780_s20, 4  ;;  %s577_s21 = int_to_ptr.vmem [resolvable:$true] %s576_s21 }
  0x1d   :  { %335 = vmatpush1.bf16.msra.mxu1 %v679_v11  ;;  %640 = vmatprep.subr.bf16.mxu0 %v718_v38  ;;  %v723_v43 = vld [vmem:[%s925_s6 + $0x20] sm:$0xff]   ;;  %v725_v45 = vld [vmem:[%s925_s6 + $0x18] sm:$0xff]   ;;  %v726_v46 = vld [vmem:[%s925_s6 + $0x50] sm:$0xff]   ;;  %p757_p6 = scmp.lt.s32.totalorder %s577_s21, %s577_s21 }
  0x1e   :  { %336 = vmatprep.subr.bf16.mxu1 %v680_v12  ;;  %v727_v47 = vld [vmem:[%s925_s6 + $0x10] sm:$0xff]   ;;  %v53_v51 = vld [vmem:[%s922_s3] sm:$0x3]  ;;  %v728_v1 = vld [vmem:[%s925_s6 + $0x48] sm:$0xff]  }
  0x1f   :  { %v58_v53 = vrot.slane %v53_v51, %v57_v50  ;;  %v62_v54 = vrot.slane %v53_v51, %v61_v52  ;;  %v729_v2 = vld [vmem:[%s925_s6 + $0x8] sm:$0xff]   ;;  %v730_v3 = vld [vmem:[%s925_s6 + $0x40] sm:$0xff]  }
  0x20   :  { %641 = vmatpush3.bf16.msra.mxu0 %v719_v39  ;;  %v731_v4 = vld [vmem:[%s925_s6] sm:$0xff]  }
  0x21   :  { %337 = vmatpush1.bf16.msra.mxu1 %v682_v13  ;;  %642 = vmatprep.subr.bf16.mxu0 %v720_v40  ;;  %v548_v5 = vld [vmem:[%s928_s9] sm:$0xff] }
  0x22   :  { %338 = vmatprep.subr.bf16.mxu1 %v683_v14  ;;  %v558_v6 = vmul.f32 %v548_v5, %v548_v5  ;;  %v156_v8 = vld [vmem:[%s924_s5] sm:$0x3] }
  0x23   :  { %v161_v9 = vrot.slane %v156_v8, %v57_v50  ;;  %v165_v10 = vrot.slane %v156_v8, %v61_v52 }
  0x24   :  { %643 = vmatpush3.bf16.msra.mxu0 %v721_v41  ;;  %v560_v7 = vsel %vm559_vm1, %v558_v6, 0.0 }
  0x25   :  { %339 = vmatpush1.bf16.msra.mxu1 %v685_v15  ;;  %644 = vmatprep.subr.bf16.mxu0 %v722_v42 }
  0x26   :  { %340 = vmatprep.subr.bf16.mxu1 %v686_v16  ;;  %561 = vadd.xlane.f32.xlu0 %v560_v7 }
  0x28   :  { %645 = vmatpush3.bf16.msra.mxu0 %v723_v43 }
  0x29   :  { %341 = vmatpush1.bf16.msra.mxu1 %v688_v17  ;;  %646 = vmatprep.subr.bf16.mxu0 %v724_v44 }
  0x2a   :  { %342 = vmatprep.subr.bf16.mxu1 %v689_v18 }
  0x2c   :  { %647 = vmatpush3.bf16.msra.mxu0 %v725_v45 }
  0x2d   :  { %343 = vmatpush1.bf16.msra.mxu1 %v691_v19  ;;  %648 = vmatprep.subr.bf16.mxu0 %v726_v46 }
  0x2e   :  { %344 = vmatprep.subr.bf16.mxu1 %v692_v20 }
  0x30   :  { %649 = vmatpush3.bf16.msra.mxu0 %v727_v47 }
  0x31   :  { %345 = vmatpush2.bf16.msra.mxu1 %v694_v21  ;;  %650 = vmatprep.subr.bf16.mxu0 %v728_v1 }
  0x32   :  { %346 = vmatprep.subr.bf16.mxu1 %v695_v22  ;;  %v637_v22 = vld [vmem:[%s927_s8] ss:$0 sm:$0xff] }
  0x34   :  { %651 = vmatpush3.bf16.msra.mxu0 %v729_v2 }
  0x35   :  { %347 = vmatpush2.bf16.msra.mxu1 %v697_v23  ;;  %652 = vmatprep.subr.bf16.mxu0 %v730_v3 }
  0x36   :  { %348 = vmatprep.subr.bf16.mxu1 %v698_v24 }
  0x38   :  { %653 = vmatpush3.bf16.msra.mxu0 %v731_v4 }
  0x39   :  { %349 = vmatpush2.bf16.msra.mxu1 %v700_v25  ;;  %v620_v25 = vld [vmem:[%s926_s7] ss:$0 sm:$0xff]  ;;  %s752_s7 = scalar_lea.vmem %s577_s21, 128 }
  0x3a   :  { %350 = vmatprep.subr.bf16.mxu1 %v701_v26  ;;  %p753_p5 = scmp.ne.s32.totalorder %s577_s21, %s752_s7  ;;  %p758_p7 = scmp.lt.s32.totalorder %s752_s7, %s752_s7 }
  0x3c   :  { %p759_p8 = por %p758_p7, %p757_p6 }
  0x3d   :  { %351 = vmatpush2.bf16.msra.mxu1 %v703_v27  ;;  %v565_v27 = vstv %s919_s0 }
  0x3e   :  { %352 = vmatprep.subr.bf16.mxu1 %v704_v28  ;;  %v556_v28 = vmul.f32 %v637_v22, %v548_v5  ;;  %p760_p9 = pnand %p759_p8, %p753_p5 }
  0x41   :  { %353 = vmatpush2.bf16.msra.mxu1 %v706_v29 }
  0x42   :  { %354 = vmatprep.subr.bf16.mxu1 %v707_v30 }
  0x45   :  { %355 = vmatpush2.bf16.msra.mxu1 %v709_v31 }
  0x46   :  { %356 = vmatprep.subr.bf16.mxu1 %v710_v32 }
  0x49   :  { %357 = vmatpush2.bf16.msra.mxu1 %v712_v33 }
  0x4a   :  { %358 = vmatprep.subr.bf16.mxu1 %v713_v34 }
  0x4d   :  { %359 = vmatpush2.bf16.msra.mxu1 %v715_v35 }
  0xaf   :  { %v562_v21 = vpop.xlane.xlu0 %561 }
  0xb0   :  { %v563_v24 = vmul.f32 -0.5, %v562_v21 }
  0xb2   :  { %v566_v32 = vadd.f32 %v565_v27, %v563_v24 }
  0xd3   :  { %v113_v55 = vpop.f32.mrf.mxu0 }
  0xd4   :  { %v114_v56 = vadd.f32 %v113_v55, %v58_v53 }
  0xd5   :  { %v115_v57 = vpop.f32.mrf.mxu0 }
  0xd6   :  { %v116_v58 = vadd.f32 %v115_v57, %v62_v54  ;;  %v120_v59 = vmax.f32 %v114_v56, 0.0 }
  0xd7   :  { %v117_v60 = vpop.f32.mrf.mxu0 }
  0xd8   :  { %v121_v61 = vmax.f32 %v116_v58, 0.0  ;;  %v122_v0 = vpack.c.bf16 %v120_v59, %v120_v59 }
  0xd9   :  { %v118_v62 = vpop.f32.mrf.mxu0 }
  0xda   :  { %v123_v63 = vpack.c.bf16 %v121_v61, %v121_v61 }
  0xdc   :  { %360 = vmatprep.mubr.bf16.mxu1 %v123_v63 }
  0xdd   :  { %361 = vmatmul.mubr.bf16.vlgmr.msra.gmra.mxu1 %v122_v0 }
 0x19d   :  { %v362_v11 = vpop.f32.mrf.mxu1 }
 0x19e   :  { %v363_v12 = vadd.f32 %v362_v11, %v161_v9 }
 0x19f   :  { %v364_v13 = vpop.f32.mrf.mxu1 }
 0x1a0   :  { %v365_v14 = vadd.f32 %v364_v13, %v165_v10  ;;  %v369_v15 = vmax.f32 %v363_v12, 0.0 }
 0x1a1   :  { %v366_v16 = vpop.f32.mrf.mxu1 }
 0x1a2   :  { %v370_v17 = vmax.f32 %v365_v14, 0.0  ;;  %v371_v20 = vpack.c.bf16 %v369_v15, %v369_v15 }
 0x1a3   :  { %v367_v18 = vpop.f32.mrf.mxu1 }
 0x1a4   :  { %v372_v19 = vpack.c.bf16 %v370_v17, %v370_v17 }
 0x1a6   :  { %540 = vmatprep.mubr.bf16.mxu0 %v372_v19 }
 0x1a7   :  { %541 = vmatmul.mubr.bf16.vlgmr.msra.gmra.mxu0 %v371_v20 }
 0x267   :  { %v654_v23 = vpop.f32.mrf.mxu0 }
 0x269   :  { %v655_v26 = vpop.f32.mrf.mxu0 }
 0x26a   :  { %v656_v29 = vadd.f32 %v655_v26, %v654_v23 }
 0x26b   :  { %v657_v30 = vpop.f32.mrf.mxu0 }
 0x26c   :  { %v543_v31 = vadd.f32 %v656_v29, %v620_v25 }
 0x26d   :  { %v658_v33 = vpop.f32.mrf.mxu0 }
 0x26e   :  { %v557_v34 = vadd.f32 %v556_v28, %v543_v31 }
 0x270   :  { %v567_v35 = vsel %vm559_vm1, %v557_v34, %v566_v32 }
 0x271   :  { %569 = vst.msk [vmem:[#allocation7] sm:$0xff] %vm568_vm2, %v567_v35 }
 0x272   :  { %763 = shalt.err (!%p760_p9)
}
 0x273   :  { %579 = dma.vmem_to_hbm [thread:$0]  %s577_s21, 128, %s929_s10, [#allocation6]  }
 0x274   :  { %774 = dma.done.wait [#allocation6], 128  }
 0x275   :  { %775 = vsyncadd [#allocation6], 4294967168 }
 0x276   :  { %583 = vsyncpa [#allocation5], 1 }
 0x277   :  { %584 = vsyncpa [#allocation6], 1 }

</bundles_post_ra>
